<compile_context>
chip_gen: v7x
topology: tpu7x:2x2x1
jax: 0.10.0
libtpu: 0.0.40
codegen_flags: <defaults>
</compile_context>

<pallas_src>
import jax
import jax.numpy as jnp
from jax.experimental import pallas as pl
from jax.experimental.pallas import tpu as pltpu


# ----------------------------------------------------------------------------
# Pallas kernel: user tower + item tower (pos & neg) + normalized dot scores
# Feature-major: every activation is (features, TB) with batch in the lanes.
# ----------------------------------------------------------------------------
def _dssm_kernel(u_ref, p_ref, n_ref,
                 uw1_ref, ub1_ref, uw2_ref, ub2_ref,
                 iw1_ref, ib1_ref, iw2_ref, ib2_ref,
                 out_ref):
    def tower(x_bf16, w1t_ref, b1_ref, w2t_ref, b2_ref):
        # layer 1: Linear (+folded eval-mode BN) + ReLU   (MXU bf16, f32 accum)
        h = jnp.dot(w1t_ref[...], x_bf16,
                    preferred_element_type=jnp.float32) + b1_ref[...]
        h = jnp.maximum(h, 0.0)
        # layer 2: Linear (+folded eval-mode BN) + ReLU
        h = jnp.dot(w2t_ref[...], h.astype(jnp.bfloat16),
                    preferred_element_type=jnp.float32) + b2_ref[...]
        h = jnp.maximum(h, 0.0)
        # F.normalize(p=2, dim=1, eps=1e-12) scale:  1 / max(||h||, eps)
        #   == rsqrt(max(||h||^2, eps^2))     (EUP slot; sublane reduction)
        inv = jax.lax.rsqrt(
            jnp.maximum(jnp.sum(h * h, axis=0, keepdims=True), 1e-24))  # (1, TB)
        return h, inv

    u, u_inv = tower(u_ref[...], uw1_ref, ub1_ref, uw2_ref, ub2_ref)
    p, p_inv = tower(p_ref[...], iw1_ref, ib1_ref, iw2_ref, ib2_ref)
    n, n_inv = tower(n_ref[...], iw1_ref, ib1_ref, iw2_ref, ib2_ref)

    # Normalization scales commute with the dot product, so apply them to the
    # per-row score instead of the full (OUT, TB) activations.
    out_ref[0:1, :] = jnp.sum(u * p, axis=0, keepdims=True) * (u_inv * p_inv)
    out_ref[1:2, :] = jnp.sum(u * n, axis=0, keepdims=True) * (u_inv * n_inv)


def _round_up(x, m):
    return (x + m - 1) // m * m


def dssm_scores(user_in_T, pos_in_T, neg_in_T, user_params, item_params,
                block_b=8192):
    """Feature-major inputs: user_in_T (Du, B), pos_in_T/neg_in_T (Di, B), f32.

    Returns (pos_score, neg_score), each of shape (B,) f32.
    """
    Du, B = user_in_T.shape
    Di = pos_in_T.shape[0]
    uw1, ub1, uw2, ub2 = user_params
    iw1, ib1, iw2, ib2 = item_params

    # Lane-dim batch tile: multiple of 128. Cap so the grid has >= 2 steps when
    # the batch allows it (v7x megacore sharding via "parallel"). Per-step VMEM
    # footprint is tiny (a few tens of KiB at TB=8192), far below every chip's
    # scoped-VMEM default, so large TB is cheap.
    B128 = _round_up(B, 128)
    TB = min(_round_up(block_b, 128), max(128, (B128 // 256) * 128))
    B_pad = _round_up(B, TB)
    G = B_pad // TB

    def pad_cols(x):
        pad = B_pad - x.shape[1]
        return jnp.pad(x, ((0, 0), (0, pad))) if pad else x

    # bf16 inputs for the MXU (halves in-kernel HBM reads). Under jit the
    # pad + cast fuses with the upstream embedding gather/transpose.
    u = pad_cols(user_in_T).astype(jnp.bfloat16)
    p = pad_cols(pos_in_T).astype(jnp.bfloat16)
    n = pad_cols(neg_in_T).astype(jnp.bfloat16)

    # Feature-major weights (h = W^T @ x) and biases as (out, 1) f32 columns.
    uw1t, uw2t = uw1.T.astype(jnp.bfloat16), uw2.T.astype(jnp.bfloat16)
    iw1t, iw2t = iw1.T.astype(jnp.bfloat16), iw2.T.astype(jnp.bfloat16)
    ub1t, ub2t = ub1.T, ub2.T
    ib1t, ib2t = ib1.T, ib2.T

    def const_spec(arr):  # full array, resident across all grid steps
        return pl.BlockSpec(arr.shape, lambda i: (0, 0))

    out = pl.pallas_call(
        _dssm_kernel,
        out_shape=jax.ShapeDtypeStruct((2, B_pad), jnp.float32),
        grid_spec=pltpu.PrefetchScalarGridSpec(
            num_scalar_prefetch=0,
            grid=(G,),
            in_specs=[
                pl.BlockSpec((Du, TB), lambda i: (0, i)),   # user tile
                pl.BlockSpec((Di, TB), lambda i: (0, i)),   # pos item tile
                pl.BlockSpec((Di, TB), lambda i: (0, i)),   # neg item tile
                const_spec(uw1t), const_spec(ub1t),
                const_spec(uw2t), const_spec(ub2t),
                const_spec(iw1t), const_spec(ib1t),
                const_spec(iw2t), const_spec(ib2t),
            ],
            out_specs=pl.BlockSpec((2, TB), lambda i: (0, i)),  # lane-dense scores
        ),
        compiler_params=pltpu.CompilerParams(
            dimension_semantics=("parallel",),
        ),
    )(u, p, n, uw1t, ub1t, uw2t, ub2t, iw1t, ib1t, iw2t, ib2t)

    return out[0, :B], out[1, :B]


# ----------------------------------------------------------------------------
# Glue: deterministic parameter init, embedding lookup, BN folding, references
# ----------------------------------------------------------------------------
def init_linear_bn(key, in_dim, out_dim):
    """Returns eval-mode-BN-folded (W, b): W (in,out), b (1,out)."""
    k1, k2, k3, k4, k5, k6 = jax.random.split(key, 6)
    w = jax.random.normal(k1, (in_dim, out_dim), jnp.float32) * 0.1
    b = jax.random.normal(k2, (out_dim,), jnp.float32) * 0.01
    gamma = 1.0 + 0.05 * jax.random.normal(k3, (out_dim,), jnp.float32)
    beta = 0.05 * jax.random.normal(k4, (out_dim,), jnp.float32)
    running_mean = 0.05 * jax.random.normal(k5, (out_dim,), jnp.float32)
    running_var = 1.0 + 0.1 * jax.random.uniform(k6, (out_dim,), jnp.float32)
    eps = 1e-5
    scale = gamma / jnp.sqrt(running_var + eps)
    shift = beta - running_mean * scale
    return w * scale[None, :], (b * scale + shift)[None, :]


def embed_concat_T(tables, idx_list):
    """Embedding lookup + concat, feature-major: list of (B,) int -> (sum_dims, B)."""
    return jnp.concatenate(
        [jnp.take(t, i, axis=0).T for t, i in zip(tables, idx_list)], axis=0)


def reference_scores_f32(user_in_T, pos_in_T, neg_in_T, user_params, item_params):
    """Pure-f32 reference (eval-mode torch semantics)."""
    def tower(x_T, params):
        w1, b1, w2, b2 = params
        x = x_T.T
        h = jnp.maximum(x @ w1 + b1, 0.0)
        h = jnp.maximum(h @ w2 + b2, 0.0)
        norm = jnp.sqrt(jnp.sum(h * h, axis=1, keepdims=True))
        return h / jnp.maximum(norm, 1e-12)
    u = tower(user_in_T, user_params)
    p = tower(pos_in_T, item_params)
    n = tower(neg_in_T, item_params)
    return jnp.sum(u * p, axis=1), jnp.sum(u * n, axis=1)


def reference_scores_bf16(user_in_T, pos_in_T, neg_in_T, user_params, item_params):
    """Reference that mimics the kernel's bf16-MXU / f32-accumulate numerics."""
    def tower(x_T, params):
        w1, b1, w2, b2 = params
        h = jnp.dot(w1.T.astype(jnp.bfloat16), x_T.astype(jnp.bfloat16),
                    preferred_element_type=jnp.float32) + b1.T
        h = jnp.maximum(h, 0.0)
        h = jnp.dot(w2.T.astype(jnp.bfloat16), h.astype(jnp.bfloat16),
                    preferred_element_type=jnp.float32) + b2.T
        h = jnp.maximum(h, 0.0)
        inv = jax.lax.rsqrt(jnp.maximum(jnp.sum(h * h, axis=0, keepdims=True), 1e-24))
        return h, inv
    u, ui = tower(user_in_T, user_params)
    p, pi = tower(pos_in_T, item_params)
    n, ni = tower(neg_in_T, item_params)
    pos = (jnp.sum(u * p, axis=0, keepdims=True) * ui * pi)[0]
    neg = (jnp.sum(u * n, axis=0, keepdims=True) * ui * ni)[0]
    return pos, neg


if __name__ == "__main__":
    key = jax.random.PRNGKey(0)
    B = 300                        # non-multiple of 128 -> exercises tail padding, G=3 grid
    EMBED_DIM = 8
    USER_VOCABS = [100, 100]       # 2 user sparse features
    ITEM_VOCABS = [50, 50]         # 2 item sparse features (pos / neg)
    user_dims = EMBED_DIM * len(USER_VOCABS)   # 16
    item_dims = EMBED_DIM * len(ITEM_VOCABS)   # 16
    HIDDEN, OUT = 32, 16                       # user_params/item_params dims = [32, 16]

    keys = jax.random.split(key, 16)

    # embedding tables (EmbeddingLayer)
    user_tables = [0.1 * jax.random.normal(keys[i], (v, EMBED_DIM), jnp.float32)
                   for i, v in enumerate(USER_VOCABS)]
    item_tables = [0.1 * jax.random.normal(keys[2 + i], (v, EMBED_DIM), jnp.float32)
                   for i, v in enumerate(ITEM_VOCABS)]
    neg_tables = [0.1 * jax.random.normal(keys[4 + i], (v, EMBED_DIM), jnp.float32)
                  for i, v in enumerate(ITEM_VOCABS)]

    # sparse feature ids
    user_idx = [jax.random.randint(keys[6], (B,), 0, USER_VOCABS[0]),
                jax.random.randint(keys[7], (B,), 0, USER_VOCABS[1])]
    pos_idx = [jax.random.randint(keys[8], (B,), 0, ITEM_VOCABS[0]),
               jax.random.randint(keys[9], (B,), 0, ITEM_VOCABS[1])]
    neg_idx = [jax.random.randint(keys[10], (B,), 0, ITEM_VOCABS[0]),
               jax.random.randint(keys[11], (B,), 0, ITEM_VOCABS[1])]

    # MLP params (Linear + eval-mode BatchNorm folded), output_layer=False
    uw1, ub1 = init_linear_bn(keys[12], user_dims, HIDDEN)
    uw2, ub2 = init_linear_bn(keys[13], HIDDEN, OUT)
    iw1, ib1 = init_linear_bn(keys[14], item_dims, HIDDEN)
    iw2, ib2 = init_linear_bn(keys[15], HIDDEN, OUT)
    user_params = (uw1, ub1, uw2, ub2)
    item_params = (iw1, ib1, iw2, ib2)

    # embedding + concat, feature-major (glue; fuses with pad/cast under jit)
    user_in_T = embed_concat_T(user_tables, user_idx)   # (16, B)
    pos_in_T = embed_concat_T(item_tables, pos_idx)     # (16, B)
    neg_in_T = embed_concat_T(neg_tables, neg_idx)      # (16, B)

    # small lane tile (TB=128) to exercise a multi-step grid (G=3, padded to 384)
    score_fn = jax.jit(lambda u, p, n: dssm_scores(
        u, p, n, user_params, item_params, block_b=128))
    pos_score, neg_score = score_fn(user_in_T, pos_in_T, neg_in_T)
    jax.block_until_ready((pos_score, neg_score))
    assert pos_score.shape == (B,) and neg_score.shape == (B,)

    # tight check vs a reference with matching bf16-MXU numerics
    rp16, rn16 = reference_scores_bf16(user_in_T, pos_in_T, neg_in_T,
                                       user_params, item_params)
    assert jnp.allclose(pos_score, rp16, atol=2e-3, rtol=2e-3)
    assert jnp.allclose(neg_score, rn16, atol=2e-3, rtol=2e-3)

    # loose sanity check vs the pure-f32 (torch eval-mode) reference
    rp32, rn32 = reference_scores_f32(user_in_T, pos_in_T, neg_in_T,
                                      user_params, item_params)
    assert jnp.allclose(pos_score, rp32, atol=6e-2, rtol=6e-2)
    assert jnp.allclose(neg_score, rn32, atol=6e-2, rtol=6e-2)

    print("KERNEL_OK")
</pallas_src>

<mosaic_0001>
module attributes {stable_mosaic.version = 11 : i64} {
  func.func @_dssm_kernel(%arg0: i32, %arg1: memref<16x128xbf16, #tpu.memory_space<vmem>>, %arg2: memref<16x128xbf16, #tpu.memory_space<vmem>>, %arg3: memref<16x128xbf16, #tpu.memory_space<vmem>>, %arg4: memref<32x16xbf16, #tpu.memory_space<vmem>>, %arg5: memref<32x1xf32, #tpu.memory_space<vmem>>, %arg6: memref<16x32xbf16, #tpu.memory_space<vmem>>, %arg7: memref<16x1xf32, #tpu.memory_space<vmem>>, %arg8: memref<32x16xbf16, #tpu.memory_space<vmem>>, %arg9: memref<32x1xf32, #tpu.memory_space<vmem>>, %arg10: memref<16x32xbf16, #tpu.memory_space<vmem>>, %arg11: memref<16x1xf32, #tpu.memory_space<vmem>>, %arg12: memref<2x128xf32, #tpu.memory_space<vmem>>) attributes {dimension_semantics = [#tpu.dimension_semantics<parallel>], iteration_bounds = array<i64: 3>, scalar_prefetch = 0 : i64, scratch_operands = 0 : i64, tpu.core_type = #tpu.core_type<tc>, window_params = [{transform_indices = @transform_0, window_bounds = array<i64: 16, 128>}, {transform_indices = @transform_1, window_bounds = array<i64: 16, 128>}, {transform_indices = @transform_2, window_bounds = array<i64: 16, 128>}, {pipeline_mode = #tpu.pipeline_mode<synchronous>, transform_indices = @transform_3, window_bounds = array<i64: 32, 16>}, {pipeline_mode = #tpu.pipeline_mode<synchronous>, transform_indices = @transform_4, window_bounds = array<i64: 32, 1>}, {pipeline_mode = #tpu.pipeline_mode<synchronous>, transform_indices = @transform_5, window_bounds = array<i64: 16, 32>}, {pipeline_mode = #tpu.pipeline_mode<synchronous>, transform_indices = @transform_6, window_bounds = array<i64: 16, 1>}, {pipeline_mode = #tpu.pipeline_mode<synchronous>, transform_indices = @transform_7, window_bounds = array<i64: 32, 16>}, {pipeline_mode = #tpu.pipeline_mode<synchronous>, transform_indices = @transform_8, window_bounds = array<i64: 32, 1>}, {pipeline_mode = #tpu.pipeline_mode<synchronous>, transform_indices = @transform_9, window_bounds = array<i64: 16, 32>}, {pipeline_mode = #tpu.pipeline_mode<synchronous>, transform_indices = @transform_10, window_bounds = array<i64: 16, 1>}, {transform_indices = @transform_11, window_bounds = array<i64: 2, 128>}]} {
    %c0 = arith.constant 0 : index
    %c0_0 = arith.constant 0 : index
    %0 = vector.load %arg1[%c0, %c0_0] : memref<16x128xbf16, #tpu.memory_space<vmem>>, vector<16x128xbf16>
    %c0_1 = arith.constant 0 : index
    %c0_2 = arith.constant 0 : index
    %1 = vector.load %arg4[%c0_1, %c0_2] : memref<32x16xbf16, #tpu.memory_space<vmem>>, vector<32x16xbf16>
    %cst = arith.constant dense<0.000000e+00> : vector<32x128xf32>
    %2 = tpu.matmul %1, %0, %cst {dimension_numbers = #tpu.dot_dimension_numbers<[1], [0], [0], [1], [0, 0, 1, 1], [], []>} : vector<32x16xbf16>, vector<16x128xbf16>, vector<32x128xf32> -> vector<32x128xf32>
    %c0_3 = arith.constant 0 : index
    %c0_4 = arith.constant 0 : index
    %3 = vector.load %arg5[%c0_3, %c0_4] : memref<32x1xf32, #tpu.memory_space<vmem>>, vector<32x1xf32>
    %4 = vector.broadcast %3 : vector<32x1xf32> to vector<32x128xf32>
    %5 = arith.addf %2, %4 : vector<32x128xf32>
    %cst_5 = arith.constant 0.000000e+00 : f32
    %6 = vector.broadcast %cst_5 : f32 to vector<32x128xf32>
    %7 = arith.maximumf %5, %6 : vector<32x128xf32>
    %c0_6 = arith.constant 0 : index
    %c0_7 = arith.constant 0 : index
    %8 = vector.load %arg6[%c0_6, %c0_7] : memref<16x32xbf16, #tpu.memory_space<vmem>>, vector<16x32xbf16>
    %9 = arith.truncf %7 : vector<32x128xf32> to vector<32x128xbf16>
    %cst_8 = arith.constant dense<0.000000e+00> : vector<16x128xf32>
    %10 = tpu.matmul %8, %9, %cst_8 {dimension_numbers = #tpu.dot_dimension_numbers<[1], [0], [0], [1], [0, 0, 1, 1], [], []>} : vector<16x32xbf16>, vector<32x128xbf16>, vector<16x128xf32> -> vector<16x128xf32>
    %c0_9 = arith.constant 0 : index
    %c0_10 = arith.constant 0 : index
    %11 = vector.load %arg7[%c0_9, %c0_10] : memref<16x1xf32, #tpu.memory_space<vmem>>, vector<16x1xf32>
    %12 = vector.broadcast %11 : vector<16x1xf32> to vector<16x128xf32>
    %13 = arith.addf %10, %12 : vector<16x128xf32>
    %cst_11 = arith.constant 0.000000e+00 : f32
    %14 = vector.broadcast %cst_11 : f32 to vector<16x128xf32>
    %15 = arith.maximumf %13, %14 : vector<16x128xf32>
    %16 = arith.mulf %15, %15 : vector<16x128xf32>
    %cst_12 = arith.constant dense<0.000000e+00> : vector<128xf32>
    %17 = vector.multi_reduction <add>, %16, %cst_12 [0] : vector<16x128xf32> to vector<128xf32>
    %18 = vector.shape_cast %17 : vector<128xf32> to vector<1x128xf32>
    %cst_13 = arith.constant 1.000000e-24 : f32
    %19 = vector.broadcast %cst_13 : f32 to vector<1x128xf32>
    %20 = arith.maximumf %18, %19 : vector<1x128xf32>
    %21 = math.rsqrt %20 : vector<1x128xf32>
    %c0_14 = arith.constant 0 : index
    %c0_15 = arith.constant 0 : index
    %22 = vector.load %arg2[%c0_14, %c0_15] : memref<16x128xbf16, #tpu.memory_space<vmem>>, vector<16x128xbf16>
    %c0_16 = arith.constant 0 : index
    %c0_17 = arith.constant 0 : index
    %23 = vector.load %arg8[%c0_16, %c0_17] : memref<32x16xbf16, #tpu.memory_space<vmem>>, vector<32x16xbf16>
    %cst_18 = arith.constant dense<0.000000e+00> : vector<32x128xf32>
    %24 = tpu.matmul %23, %22, %cst_18 {dimension_numbers = #tpu.dot_dimension_numbers<[1], [0], [0], [1], [0, 0, 1, 1], [], []>} : vector<32x16xbf16>, vector<16x128xbf16>, vector<32x128xf32> -> vector<32x128xf32>
    %c0_19 = arith.constant 0 : index
    %c0_20 = arith.constant 0 : index
    %25 = vector.load %arg9[%c0_19, %c0_20] : memref<32x1xf32, #tpu.memory_space<vmem>>, vector<32x1xf32>
    %26 = vector.broadcast %25 : vector<32x1xf32> to vector<32x128xf32>
    %27 = arith.addf %24, %26 : vector<32x128xf32>
    %cst_21 = arith.constant 0.000000e+00 : f32
    %28 = vector.broadcast %cst_21 : f32 to vector<32x128xf32>
    %29 = arith.maximumf %27, %28 : vector<32x128xf32>
    %c0_22 = arith.constant 0 : index
    %c0_23 = arith.constant 0 : index
    %30 = vector.load %arg10[%c0_22, %c0_23] : memref<16x32xbf16, #tpu.memory_space<vmem>>, vector<16x32xbf16>
    %31 = arith.truncf %29 : vector<32x128xf32> to vector<32x128xbf16>
    %cst_24 = arith.constant dense<0.000000e+00> : vector<16x128xf32>
    %32 = tpu.matmul %30, %31, %cst_24 {dimension_numbers = #tpu.dot_dimension_numbers<[1], [0], [0], [1], [0, 0, 1, 1], [], []>} : vector<16x32xbf16>, vector<32x128xbf16>, vector<16x128xf32> -> vector<16x128xf32>
    %c0_25 = arith.constant 0 : index
    %c0_26 = arith.constant 0 : index
    %33 = vector.load %arg11[%c0_25, %c0_26] : memref<16x1xf32, #tpu.memory_space<vmem>>, vector<16x1xf32>
    %34 = vector.broadcast %33 : vector<16x1xf32> to vector<16x128xf32>
    %35 = arith.addf %32, %34 : vector<16x128xf32>
    %cst_27 = arith.constant 0.000000e+00 : f32
    %36 = vector.broadcast %cst_27 : f32 to vector<16x128xf32>
    %37 = arith.maximumf %35, %36 : vector<16x128xf32>
    %38 = arith.mulf %37, %37 : vector<16x128xf32>
    %cst_28 = arith.constant dense<0.000000e+00> : vector<128xf32>
    %39 = vector.multi_reduction <add>, %38, %cst_28 [0] : vector<16x128xf32> to vector<128xf32>
    %40 = vector.shape_cast %39 : vector<128xf32> to vector<1x128xf32>
    %cst_29 = arith.constant 1.000000e-24 : f32
    %41 = vector.broadcast %cst_29 : f32 to vector<1x128xf32>
    %42 = arith.maximumf %40, %41 : vector<1x128xf32>
    %43 = math.rsqrt %42 : vector<1x128xf32>
    %c0_30 = arith.constant 0 : index
    %c0_31 = arith.constant 0 : index
    %44 = vector.load %arg3[%c0_30, %c0_31] : memref<16x128xbf16, #tpu.memory_space<vmem>>, vector<16x128xbf16>
    %c0_32 = arith.constant 0 : index
    %c0_33 = arith.constant 0 : index
    %45 = vector.load %arg8[%c0_32, %c0_33] : memref<32x16xbf16, #tpu.memory_space<vmem>>, vector<32x16xbf16>
    %cst_34 = arith.constant dense<0.000000e+00> : vector<32x128xf32>
    %46 = tpu.matmul %45, %44, %cst_34 {dimension_numbers = #tpu.dot_dimension_numbers<[1], [0], [0], [1], [0, 0, 1, 1], [], []>} : vector<32x16xbf16>, vector<16x128xbf16>, vector<32x128xf32> -> vector<32x128xf32>
    %c0_35 = arith.constant 0 : index
    %c0_36 = arith.constant 0 : index
    %47 = vector.load %arg9[%c0_35, %c0_36] : memref<32x1xf32, #tpu.memory_space<vmem>>, vector<32x1xf32>
    %48 = vector.broadcast %47 : vector<32x1xf32> to vector<32x128xf32>
    %49 = arith.addf %46, %48 : vector<32x128xf32>
    %cst_37 = arith.constant 0.000000e+00 : f32
    %50 = vector.broadcast %cst_37 : f32 to vector<32x128xf32>
    %51 = arith.maximumf %49, %50 : vector<32x128xf32>
    %c0_38 = arith.constant 0 : index
    %c0_39 = arith.constant 0 : index
    %52 = vector.load %arg10[%c0_38, %c0_39] : memref<16x32xbf16, #tpu.memory_space<vmem>>, vector<16x32xbf16>
    %53 = arith.truncf %51 : vector<32x128xf32> to vector<32x128xbf16>
    %cst_40 = arith.constant dense<0.000000e+00> : vector<16x128xf32>
    %54 = tpu.matmul %52, %53, %cst_40 {dimension_numbers = #tpu.dot_dimension_numbers<[1], [0], [0], [1], [0, 0, 1, 1], [], []>} : vector<16x32xbf16>, vector<32x128xbf16>, vector<16x128xf32> -> vector<16x128xf32>
    %c0_41 = arith.constant 0 : index
    %c0_42 = arith.constant 0 : index
    %55 = vector.load %arg11[%c0_41, %c0_42] : memref<16x1xf32, #tpu.memory_space<vmem>>, vector<16x1xf32>
    %56 = vector.broadcast %55 : vector<16x1xf32> to vector<16x128xf32>
    %57 = arith.addf %54, %56 : vector<16x128xf32>
    %cst_43 = arith.constant 0.000000e+00 : f32
    %58 = vector.broadcast %cst_43 : f32 to vector<16x128xf32>
    %59 = arith.maximumf %57, %58 : vector<16x128xf32>
    %60 = arith.mulf %59, %59 : vector<16x128xf32>
    %cst_44 = arith.constant dense<0.000000e+00> : vector<128xf32>
    %61 = vector.multi_reduction <add>, %60, %cst_44 [0] : vector<16x128xf32> to vector<128xf32>
    %62 = vector.shape_cast %61 : vector<128xf32> to vector<1x128xf32>
    %cst_45 = arith.constant 1.000000e-24 : f32
    %63 = vector.broadcast %cst_45 : f32 to vector<1x128xf32>
    %64 = arith.maximumf %62, %63 : vector<1x128xf32>
    %65 = math.rsqrt %64 : vector<1x128xf32>
    %66 = arith.mulf %15, %37 : vector<16x128xf32>
    %cst_46 = arith.constant dense<0.000000e+00> : vector<128xf32>
    %67 = vector.multi_reduction <add>, %66, %cst_46 [0] : vector<16x128xf32> to vector<128xf32>
    %68 = vector.shape_cast %67 : vector<128xf32> to vector<1x128xf32>
    %69 = arith.mulf %21, %43 : vector<1x128xf32>
    %70 = arith.mulf %68, %69 : vector<1x128xf32>
    %c0_47 = arith.constant 0 : index
    %c0_48 = arith.constant 0 : index
    %71 = vector.load %arg12[%c0_47, %c0_48] : memref<2x128xf32, #tpu.memory_space<vmem>>, vector<1x128xf32>
    tpu.vector_store %arg12[%c0_47, %c0_48], %70 {strides = array<i32>} : memref<2x128xf32, #tpu.memory_space<vmem>>, vector<1x128xf32>,
    %72 = arith.mulf %15, %59 : vector<16x128xf32>
    %cst_49 = arith.constant dense<0.000000e+00> : vector<128xf32>
    %73 = vector.multi_reduction <add>, %72, %cst_49 [0] : vector<16x128xf32> to vector<128xf32>
    %74 = vector.shape_cast %73 : vector<128xf32> to vector<1x128xf32>
    %75 = arith.mulf %21, %65 : vector<1x128xf32>
    %76 = arith.mulf %74, %75 : vector<1x128xf32>
    %c1 = arith.constant 1 : index
    %c0_50 = arith.constant 0 : index
    %77 = vector.load %arg12[%c1, %c0_50] : memref<2x128xf32, #tpu.memory_space<vmem>>, vector<1x128xf32>
    tpu.vector_store %arg12[%c1, %c0_50], %76 {strides = array<i32>} : memref<2x128xf32, #tpu.memory_space<vmem>>, vector<1x128xf32>,
    return
  }
  func.func @transform_0(%arg0: i32) -> (i32, i32) {
    %c0_i32 = arith.constant 0 : i32
    %c0_i32_0 = arith.constant 0 : i32
    return %c0_i32, %arg0 : i32, i32
  }
  func.func @transform_1(%arg0: i32) -> (i32, i32) {
    %c0_i32 = arith.constant 0 : i32
    %c0_i32_0 = arith.constant 0 : i32
    return %c0_i32, %arg0 : i32, i32
  }
  func.func @transform_2(%arg0: i32) -> (i32, i32) {
    %c0_i32 = arith.constant 0 : i32
    %c0_i32_0 = arith.constant 0 : i32
    return %c0_i32, %arg0 : i32, i32
  }
  func.func @transform_3(%arg0: i32) -> (i32, i32) {
    %c0_i32 = arith.constant 0 : i32
    %c0_i32_0 = arith.constant 0 : i32
    %c0_i32_1 = arith.constant 0 : i32
    return %c0_i32, %c0_i32_0 : i32, i32
  }
  func.func @transform_4(%arg0: i32) -> (i32, i32) {
    %c0_i32 = arith.constant 0 : i32
    %c0_i32_0 = arith.constant 0 : i32
    %c0_i32_1 = arith.constant 0 : i32
    return %c0_i32, %c0_i32_0 : i32, i32
  }
  func.func @transform_5(%arg0: i32) -> (i32, i32) {
    %c0_i32 = arith.constant 0 : i32
    %c0_i32_0 = arith.constant 0 : i32
    %c0_i32_1 = arith.constant 0 : i32
    return %c0_i32, %c0_i32_0 : i32, i32
  }
  func.func @transform_6(%arg0: i32) -> (i32, i32) {
    %c0_i32 = arith.constant 0 : i32
    %c0_i32_0 = arith.constant 0 : i32
    %c0_i32_1 = arith.constant 0 : i32
    return %c0_i32, %c0_i32_0 : i32, i32
  }
  func.func @transform_7(%arg0: i32) -> (i32, i32) {
    %c0_i32 = arith.constant 0 : i32
    %c0_i32_0 = arith.constant 0 : i32
    %c0_i32_1 = arith.constant 0 : i32
    return %c0_i32, %c0_i32_0 : i32, i32
  }
  func.func @transform_8(%arg0: i32) -> (i32, i32) {
    %c0_i32 = arith.constant 0 : i32
    %c0_i32_0 = arith.constant 0 : i32
    %c0_i32_1 = arith.constant 0 : i32
    return %c0_i32, %c0_i32_0 : i32, i32
  }
  func.func @transform_9(%arg0: i32) -> (i32, i32) {
    %c0_i32 = arith.constant 0 : i32
    %c0_i32_0 = arith.constant 0 : i32
    %c0_i32_1 = arith.constant 0 : i32
    return %c0_i32, %c0_i32_0 : i32, i32
  }
  func.func @transform_10(%arg0: i32) -> (i32, i32) {
    %c0_i32 = arith.constant 0 : i32
    %c0_i32_0 = arith.constant 0 : i32
    %c0_i32_1 = arith.constant 0 : i32
    return %c0_i32, %c0_i32_0 : i32, i32
  }
  func.func @transform_11(%arg0: i32) -> (i32, i32) {
    %c0_i32 = arith.constant 0 : i32
    %c0_i32_0 = arith.constant 0 : i32
    return %c0_i32, %arg0 : i32, i32
  }
}

</mosaic_0001>

<bundles_post_ra>
// kernel: _lambda_.1
= control target key start
LH: loop header
LB: loop body
LE: loop exit
PB: predicated region body
PF: predicated region fallthrough
CT: control target
= control target key end

     0   :  { %s1391_s17 = smov 0   ;;  %s1393_s18 = smov 0   ;;  %s1540_s0 = inlined_call_operand.vmem [shape: bf16[16,384], index: 0, kind: input, shape index: {}]   ;;  %s1541_s1 = inlined_call_operand.vmem [shape: bf16[16,384], index: 1, kind: input, shape index: {}]   ;;  %s1542_s2 = inlined_call_operand.vmem [shape: bf16[16,384], index: 2, kind: input, shape index: {}]   ;;  %s1543_s3 = inlined_call_operand.vmem [shape: bf16[32,16], index: 3, kind: input, shape index: {}]   ;;  %s1544_s4 = inlined_call_operand.vmem [shape: f32[32,1], index: 4, kind: input, shape index: {}]   ;;  %s1545_s5 = inlined_call_operand.vmem [shape: bf16[16,32], index: 5, kind: input, shape index: {}]   ;;  %s1546_s6 = inlined_call_operand.vmem [shape: f32[16,1], index: 6, kind: input, shape index: {}]   ;;  %s1547_s7 = inlined_call_operand.vmem [shape: bf16[32,16], index: 7, kind: input, shape index: {}]   ;;  %s1548_s8 = inlined_call_operand.vmem [shape: f32[32,1], index: 8, kind: input, shape index: {}]   ;;  %s1549_s9 = inlined_call_operand.vmem [shape: bf16[16,32], index: 9, kind: input, shape index: {}]   ;;  %s1550_s10 = inlined_call_operand.vmem [shape: f32[16,1], index: 10, kind: input, shape index: {}]   ;;  %s1551_s11 = inlined_call_operand.vmem [shape: f32[2,384], index: 11, kind: output, shape index: {}]  }
   0x1   :  { %s1395_s19 = smov 0  }
   0x2 LB: > { %s1165_s20 = sadd.s32 4294967295, %s1326_s19   ;;  %s1408_s21 = sadd.s32 1, %s1326_s19   ;;  %s1326_s19 = sphi %s1395_s19, %s1555_s19   ;;  %s1322_s18 = sphi %s1393_s18, %s1554_s18   ;;  %s1318_s17 = sphi %s1391_s17, %s1553_s17  }
   0x3   : > { %s25_s22 = ssub.s32 %s1326_s19, %s1408_s21  ;;  %s28_s23 = sadd.s32 1, %s1322_s18 }
   0x4   : > { %p26_p0 = scmp.eq.s32.totalorder %s25_s22, 0  ;;  %p35_p1 = scmp.ne.s32.totalorder %s1322_s18, %s1318_s17 }
   0x5   : > { %p36_p2 = scmp.eq.s32.totalorder %s1326_s19, 0  ;;  %p1168_p4 = scmp.ge.s32.totalorder %s1326_s19, 3 }
   0x6   : > { %s1417_s24 = scalar_select %p26_p0, %s1322_s18, %s28_s23  }
   0x7   : > { %p1419_p3 = por %p36_p2, %p35_p1  ;;  %331 = sbr.rel (%p1168_p4) target bundleno = 35 (0x23), region = 48 }
   0xe   : > { %334 = sbr.rel (!%p1419_p3) target bundleno = 21 (0x15), region = 52  ;;  %s336_s26 = sand.u32 (%p1419_p3), 1, %s1322_s18  }
   0xf   : > { %s1170_s27 = sshll.u32 (%p1419_p3), %s1326_s19, 2  ;;  %s1169_s28 = sshll.u32 (%p1419_p3), %s336_s26, 3 }
  0x10   : > { %s340_s12 = scalar_lea.vmem (%p1419_p3), %s1540_s0, %s1170_s27  ;;  %s338_s13 = scalar_lea.vmem (%p1419_p3), [#allocation2], %s1169_s28 }
  0x11   : > { %v356_v0 = vld [vmem:[%s340_s12] sm:$0xf] (%p1419_p3)  ;;  %v358_v1 = vld [vmem:[%s340_s12 + $0xc] sm:$0xf] (%p1419_p3) }
  0x12   : > { %357 = vst [vmem:[%s338_s13] sm:$0xf] (%p1419_p3), %v356_v0  ;;  %359 = vst [vmem:[%s338_s13 + $0x4] sm:$0xf] (%p1419_p3), %v358_v1 }
  0x15 PF: > { %386 = sbr.rel (!%p1419_p3) target bundleno = 28 (0x1c), region = 93  ;;  %s388_s14 = sand.u32 (%p1419_p3), 1, %s1322_s18  }
  0x16   : > { %s1172_s15 = sshll.u32 (%p1419_p3), %s1326_s19, 2  ;;  %s1171_s16 = sshll.u32 (%p1419_p3), %s388_s14, 3 }
  0x17   : > { %s392_s26 = scalar_lea.vmem (%p1419_p3), %s1541_s1, %s1172_s15  ;;  %s390_s27 = scalar_lea.vmem (%p1419_p3), [#allocation3], %s1171_s16 }
  0x18   : > { %v408_v2 = vld [vmem:[%s392_s26] sm:$0xf] (%p1419_p3)  ;;  %v410_v3 = vld [vmem:[%s392_s26 + $0xc] sm:$0xf] (%p1419_p3) }
  0x19   : > { %409 = vst [vmem:[%s390_s27] sm:$0xf] (%p1419_p3), %v408_v2  ;;  %411 = vst [vmem:[%s390_s27 + $0x4] sm:$0xf] (%p1419_p3), %v410_v3 }
  0x1c PF: > { %438 = sbr.rel (!%p1419_p3) target bundleno = 35 (0x23), region = 134  ;;  %s440_s28 = sand.u32 (%p1419_p3), 1, %s1322_s18  }
  0x1d   : > { %s1174_s29 = sshll.u32 (%p1419_p3), %s1326_s19, 2  ;;  %s1173_s30 = sshll.u32 (%p1419_p3), %s440_s28, 3 }
  0x1e   : > { %s444_s14 = scalar_lea.vmem (%p1419_p3), %s1542_s2, %s1174_s29  ;;  %s442_s15 = scalar_lea.vmem (%p1419_p3), [#allocation4], %s1173_s30 }
  0x1f   : > { %v460_v4 = vld [vmem:[%s444_s14] sm:$0xf] (%p1419_p3)  ;;  %v462_v5 = vld [vmem:[%s444_s14 + $0xc] sm:$0xf] (%p1419_p3) }
  0x20   : > { %461 = vst [vmem:[%s442_s15] sm:$0xf] (%p1419_p3), %v460_v4  ;;  %463 = vst [vmem:[%s442_s15 + $0x4] sm:$0xf] (%p1419_p3), %v462_v5 }
  0x23 PF: > { %p1175_p5 = scmp.ge.s32.totalorder %s1326_s19, 1  ;;  %p489_p6 = scmp.lt.s32.totalorder %s1326_s19, 4 }
  0x25   : > { %p490_p7 = pnand %p1175_p5, %p489_p6 }
  0x26   : > { %s496_s25 = sand.u32 (!%p490_p7), 1, %s1318_s17   ;;  %v1290_v6 = vld [vmem:[%s1543_s3] sm:$0xff] (!%p490_p7)   ;;  %vm607_vm0 = vcmask (!%p490_p7), 130048   ;;  %v1291_v8 = vld [vmem:[%s1543_s3 + $0x8] sm:$0xff] (!%p490_p7)   ;;  %v1328_v10 = vmov (!%p490_p7), 0   ;;  %v569_v14 = vld [vmem:[%s1544_s4 + $0x10] sm:$0xff] (!%p490_p7) }
  0x27   : > { %493 = sbr.rel (%p490_p7) target bundleno = 542 (0x21e), region = 175  ;;  %s1176_s23 = sshll.u32 (!%p490_p7), %s496_s25, 3  ;;  %1220 = vmatprep.mubr.msk.bf16.mxu0 (!%p490_p7), %vm607_vm0, %v1290_v6  ;;  %1287 = vset.pattern.permute.xlu0 (!%p490_p7), %v1328_v10  ;;  %v1293_v11 = vld [vmem:[%s1547_s7] sm:$0xff] (!%p490_p7)   ;;  %v568_v15 = vld [vmem:[%s1544_s4 + $0x8] sm:$0xff] (!%p490_p7)  ;;  %v570_v16 = vld [vmem:[%s1544_s4 + $0x18] sm:$0xff] (!%p490_p7)  ;;  %v1329_v26 = vmov (!%p490_p7), 0.0  }
  0x28   : > { %s498_s26 = scalar_lea.vmem (!%p490_p7), [#allocation2], %s1176_s23  ;;  %s505_s29 = scalar_lea.vmem (!%p490_p7), [#allocation3], %s1176_s23  ;;  %1288 = vset.pattern.permute.xlu1 (!%p490_p7), %v1328_v10  ;;  %v567_v13 = vld [vmem:[%s1544_s4] sm:$0xff] (!%p490_p7)  ;;  %v1294_v17 = vld [vmem:[%s1547_s7 + $0x8] sm:$0xff] (!%p490_p7)   ;;  %v754_v20 = vld [vmem:[%s1548_s8 + $0x10] sm:$0xff] (!%p490_p7)  ;;  %1224 = vmatprep.subr.bf16.mxu1 (!%p490_p7), %v1329_v26  ;;  %vm1330_vm1 = vmmov (!%p490_p7), 0  }
  0x29   : > { %v1289_v7 = vld [vmem:[%s498_s26] sm:$0xff] (!%p490_p7)   ;;  %v1292_v9 = vld [vmem:[%s505_s29] sm:$0xff] (!%p490_p7)   ;;  %s512_s12 = scalar_lea.vmem (!%p490_p7), [#allocation4], %s1176_s23  ;;  %573 = vperm.xlu0 (!%p490_p7), %1287, %v567_v13   ;;  %583 = vperm.xlu1 (!%p490_p7), %1288, %v569_v14   ;;  %vm688_vm2 = vcmask (!%p490_p7), 261120   ;;  %p556_p8 = scmp.lt.s32.totalorder (!%p490_p7), %s1165_s20, 2 }
  0x2a   : > { %1218 = vmatprep.subr.bf16.mxu0 (!%p490_p7), %v1289_v7  ;;  %v1295_v12 = vld [vmem:[%s512_s12] sm:$0xff] (!%p490_p7)   ;;  %v755_v21 = vld [vmem:[%s1548_s8 + $0x18] sm:$0xff] (!%p490_p7)  ;;  %1228 = vmatprep.mubr.msk.bf16.mxu1 (!%p490_p7), %vm1330_vm1, %v1329_v26 }
  0x2b   : > { %1219 = vmatpush3.bf16.msra.mxu0 (!%p490_p7), %v1289_v7  ;;  %v752_v18 = vld [vmem:[%s1548_s8] sm:$0xff] (!%p490_p7)  ;;  %v753_v19 = vld [vmem:[%s1548_s8 + $0x8] sm:$0xff] (!%p490_p7) }
  0x2c   : > { %1232 = vmatprep.subr.bf16.mxu0 (!%p490_p7), %v1292_v9  ;;  %v671_v22 = vld [vmem:[%s1546_s6] sm:$0xff] (!%p490_p7)  ;;  %v672_v23 = vld [vmem:[%s1546_s6 + $0x8] sm:$0xff] (!%p490_p7) }
  0x2d   : > { %578 = vperm.xlu0 (!%p490_p7), %1287, %v568_v15   ;;  %588 = vperm.xlu1 (!%p490_p7), %1288, %v570_v16   ;;  %v855_v24 = vld [vmem:[%s1550_s10] sm:$0xff] (!%p490_p7)  ;;  %v856_v25 = vld [vmem:[%s1550_s10 + $0x8] sm:$0xff] (!%p490_p7) }
  0x2e   : > { %1221 = vmatmul.mubr.msk.bf16.vlgmr.msra.gmra.mrb[0].mxu0 %vm607_vm0, %v1291_v8  ;;  %v1296_v59 = vld [vmem:[%s1545_s5] sm:$0xff]   ;;  %s1557_s20 = smov (!%p556_p8, %s1165_s20), 2 }
  0x2f   : > { %1233 = vmatpush3.bf16.msra.mxu0 %v1292_v9  ;;  %1234 = vmatprep.mubr.msk.bf16.mxu0 %vm607_vm0, %v1293_v11  ;;  %v1297_v10 = vld [vmem:[%s1549_s9] sm:$0xff]   ;;  %s1179_s15 = sshll.u32 %s1557_s20, 1 }
  0x30   : > { %1246 = vmatprep.subr.bf16.mxu0 %v1295_v12  ;;  %s559_s22 = scalar_lea.vmem %s1551_s11, %s1179_s15 }
  0x31   : > { %758 = vperm.xlu0 %1287, %v752_v18   ;;  %763 = vperm.xlu1 %1288, %v753_v19  }
  0x35   : > { %768 = vperm.xlu0 %1287, %v754_v20   ;;  %773 = vperm.xlu1 %1288, %v755_v21  }
  0x36   : > { %1235 = vmatmul.mubr.msk.bf16.vlgmr.msra.gmra.mrb[4].mxu0 %vm607_vm0, %v1294_v17 }
  0x37   : > { %1247 = vmatpush3.bf16.msra.mxu0 %v1295_v12  ;;  %1248 = vmatprep.mubr.msk.bf16.mxu0 %vm607_vm0, %v1293_v11 }
  0x39   : > { %675 = vperm.xlu0 %1287, %v671_v22   ;;  %680 = vperm.xlu1 %1288, %v672_v23  }
  0x3d   : > { %859 = vperm.xlu0 %1287, %v855_v24   ;;  %864 = vperm.xlu1 %1288, %v856_v25  }
  0x3e   : > { %1249 = vmatmul.mubr.msk.bf16.vlgmr.msra.gmra.mrb[8].mxu0 %vm607_vm0, %v1294_v17 }
  0xa8   : > { %v574_v27 = vpop.permute.xlu0 %573  ;;  %v584_v28 = vpop.permute.xlu1 %583 }
  0xac   : > { %v579_v29 = vpop.permute.xlu0 %578  ;;  %v589_v30 = vpop.permute.xlu1 %588 }
  0xb0   : > { %v759_v34 = vpop.permute.xlu0 %758  ;;  %v764_v39 = vpop.permute.xlu1 %763 }
  0xb4   : > { %v769_v46 = vpop.permute.xlu0 %768  ;;  %v774_v51 = vpop.permute.xlu1 %773 }
  0xb8   : > { %v676_v15 = vpop.permute.xlu0 %675  ;;  %v681_v19 = vpop.permute.xlu1 %680 }
 0x101   : > { %v1222_v31 = vpop.f32.mrb[0].mxu0 }
 0x102   : > { %v657_v32 = vadd.f32 %v1222_v31, %v584_v28  ;;  %v648_v33 = vpop.f32.mrb[1].mxu0  ;;  %v860_v28 = vpop.permute.xlu0 %859 }
 0x103   : > { %v649_v35 = vadd.f32 %v648_v33, %v574_v27  ;;  %v1223_v36 = vpop.f32.mrb[2].mxu0 }
 0x104   : > { %v660_v37 = vadd.f32 %v1223_v36, %v589_v30  ;;  %v651_v38 = vpop.f32.mrb[3].mxu0  ;;  %v665_v41 = vmax.f32 %v657_v32, 0.0  ;;  %v865_v32 = vpop.permute.xlu1 %864 }
 0x105   : > { %v652_v40 = vadd.f32 %v651_v38, %v579_v29  ;;  %v663_v43 = vmax.f32 %v649_v35, 0.0 }
 0x106   : > { %v666_v42 = vmax.f32 %v660_v37, 0.0 }
 0x107   : > { %v664_v44 = vmax.f32 %v652_v40, 0.0 }
 0x108   : > { %v670_v45 = vpack.c.bf16 %v666_v42, %v665_v41 }
 0x109   : > { %v1236_v47 = vpop.f32.mrb[4].mxu0  ;;  %v669_v48 = vpack.c.bf16 %v664_v44, %v663_v43 }
 0x10a   : > { %v841_v49 = vadd.f32 %v1236_v47, %v769_v46  ;;  %v832_v50 = vpop.f32.mrb[5].mxu0 }
 0x10b   : > { %v833_v52 = vadd.f32 %v832_v50, %v759_v34  ;;  %1225 = vmatpush3.bf16.msra.mxu1 %v669_v48  ;;  %v1237_v53 = vpop.f32.mrb[6].mxu0 }
 0x10c   : > { %v844_v54 = vadd.f32 %v1237_v53, %v774_v51  ;;  %v835_v55 = vpop.f32.mrb[7].mxu0  ;;  %1226 = vmatprep.subr.bf16.mxu1 %v1329_v26  ;;  %v849_v57 = vmax.f32 %v841_v49, 0.0 }
 0x10d   : > { %v836_v56 = vadd.f32 %v835_v55, %v764_v39  ;;  %v847_v60 = vmax.f32 %v833_v52, 0.0 }
 0x10e   : > { %v850_v58 = vmax.f32 %v844_v54, 0.0 }
 0x10f   : > { %v848_v61 = vmax.f32 %v836_v56, 0.0  ;;  %1227 = vmatpush3.bf16.msra.mxu1 %v670_v45 }
 0x110   : > { %v854_v62 = vpack.c.bf16 %v850_v58, %v849_v57  ;;  %1238 = vmatprep.subr.bf16.mxu1 %v1329_v26 }
 0x111   : > { %v853_v63 = vpack.c.bf16 %v848_v61, %v847_v60  ;;  %v1250_v0 = vpop.f32.mrb[8].mxu0 }
 0x112   : > { %v980_v1 = vadd.f32 %v1250_v0, %v769_v46  ;;  %1229 = vmatmul.mubr.msk.bf16.vlgmr.msra.gmra.mrb[0].mxu1 %vm688_vm2, %v1296_v59  ;;  %v971_v2 = vpop.f32.mrb[9].mxu0 }
 0x113   : > { %v972_v3 = vadd.f32 %v971_v2, %v759_v34  ;;  %1239 = vmatpush3.bf16.msra.mxu1 %v853_v63  ;;  %v1251_v4 = vpop.f32.mrb[10].mxu0  ;;  %1242 = vmatprep.mubr.msk.bf16.mxu1 %vm1330_vm1, %v1329_v26 }
 0x114   : > { %v983_v5 = vadd.f32 %v1251_v4, %v774_v51  ;;  %v974_v6 = vpop.f32.mrb[11].mxu0  ;;  %1240 = vmatprep.subr.bf16.mxu1 %v1329_v26  ;;  %v988_v8 = vmax.f32 %v980_v1, 0.0 }
 0x115   : > { %v975_v7 = vadd.f32 %v974_v6, %v764_v39  ;;  %v986_v11 = vmax.f32 %v972_v3, 0.0 }
 0x116   : > { %v989_v9 = vmax.f32 %v983_v5, 0.0 }
 0x117   : > { %v987_v12 = vmax.f32 %v975_v7, 0.0  ;;  %1241 = vmatpush3.bf16.msra.mxu1 %v854_v62 }
 0x118   : > { %v991_v13 = vpack.c.bf16 %v989_v9, %v988_v8  ;;  %1252 = vmatprep.subr.bf16.mxu1 %v1329_v26 }
 0x119   : > { %v990_v14 = vpack.c.bf16 %v987_v12, %v986_v11 }
 0x11a   : > { %1243 = vmatmul.mubr.msk.bf16.vlgmr.msra.gmra.mrb[4].mxu1 %vm688_vm2, %v1297_v10 }
 0x11b   : > { %1253 = vmatpush3.bf16.msra.mxu1 %v990_v14  ;;  %1256 = vmatprep.mubr.msk.bf16.mxu1 %vm1330_vm1, %v1329_v26 }
 0x11c   : > { %1254 = vmatprep.subr.bf16.mxu1 %v1329_v26 }
 0x11f   : > { %1255 = vmatpush3.bf16.msra.mxu1 %v991_v13 }
 0x122   : > { %1257 = vmatmul.mubr.msk.bf16.vlgmr.msra.gmra.mrb[8].mxu1 %vm688_vm2, %v1297_v10 }
 0x1e5   : > { %v726_v16 = vpop.f32.mrb[0].mxu1 }
 0x1e6   : > { %v727_v17 = vadd.f32 %v726_v16, %v676_v15  ;;  %v1230_v18 = vpop.f32.mrb[1].mxu1 }
 0x1e7   : > { %v729_v20 = vpop.f32.mrb[2].mxu1 }
 0x1e8   : > { %v733_v21 = vmax.f32 %v727_v17, 0.0  ;;  %v730_v22 = vadd.f32 %v729_v20, %v681_v19  ;;  %v1231_v23 = vpop.f32.mrb[3].mxu1 }
 0x1ea   : > { %v734_v24 = vmax.f32 %v730_v22, 0.0  ;;  %v735_v25 = vmul.f32 %v733_v21, %v733_v21 }
 0x1ec   : > { %v736_v27 = vmul.f32 %v734_v24, %v734_v24 }
 0x1ed   : > { %v909_v29 = vpop.f32.mrb[4].mxu1 }
 0x1ee   : > { %v737_v30 = vadd.f32 %v736_v27, %v735_v25  ;;  %v910_v31 = vadd.f32 %v909_v29, %v860_v28  ;;  %v1244_v26 = vpop.f32.mrb[5].mxu1 }
 0x1ef   : > { %v912_v33 = vpop.f32.mrb[6].mxu1 }
 0x1f0   : > { %v738_v34 = vrot.slane %v737_v30, 4  ;;  %v916_v35 = vmax.f32 %v910_v31, 0.0  ;;  %v913_v36 = vadd.f32 %v912_v33, %v865_v32  ;;  %v1245_v37 = vpop.f32.mrb[7].mxu1 }
 0x1f2   : > { %v739_v38 = vadd.f32 %v738_v34, %v737_v30  ;;  %v1046_v39 = vmul.f32 %v916_v35, %v733_v21  ;;  %v917_v40 = vmax.f32 %v913_v36, 0.0  ;;  %v918_v42 = vmul.f32 %v916_v35, %v916_v35 }
 0x1f4   : > { %v740_v41 = vrot.slane %v739_v38, 2  ;;  %v919_v43 = vmul.f32 %v917_v40, %v917_v40  ;;  %v1047_v44 = vmul.f32 %v917_v40, %v734_v24 }
 0x1f5   : > { %v1026_v45 = vpop.f32.mrb[8].mxu1 }
 0x1f6   : > { %v741_v46 = vadd.f32 %v740_v41, %v739_v38  ;;  %v920_v47 = vadd.f32 %v919_v43, %v918_v42  ;;  %v1048_v48 = vadd.f32 %v1047_v44, %v1046_v39  ;;  %v1027_v49 = vadd.f32 %v1026_v45, %v860_v28  ;;  %v1258_v50 = vpop.f32.mrb[9].mxu1 }
 0x1f7   : > { %v1029_v51 = vpop.f32.mrb[10].mxu1 }
 0x1f8   : > { %v921_v52 = vrot.slane %v920_v47, 4  ;;  %v1033_v53 = vmax.f32 %v1027_v49, 0.0  ;;  %v1259_v54 = vpop.f32.mrb[11].mxu1  ;;  %v742_v55 = vrot.slane %v741_v46, 1  ;;  %v1030_v56 = vadd.f32 %v1029_v51, %v865_v32 }
 0x1f9   : > { %v1049_v61 = vrot.slane %v1048_v48, 4 }
 0x1fa   : > { %v922_v57 = vadd.f32 %v921_v52, %v920_v47  ;;  %v1058_v58 = vmul.f32 %v1033_v53, %v733_v21  ;;  %v1034_v59 = vmax.f32 %v1030_v56, 0.0  ;;  %v743_v62 = vadd.f32 %v742_v55, %v741_v46 }
 0x1fb   : > { %v1035_v63 = vmul.f32 %v1033_v53, %v1033_v53  ;;  %v1050_v7 = vadd.f32 %v1049_v61, %v1048_v48 }
 0x1fc   : > { %v923_v60 = vrot.slane %v922_v57, 2  ;;  %v1036_v0 = vmul.f32 %v1034_v59, %v1034_v59  ;;  %v1059_v1 = vmul.f32 %v1034_v59, %v734_v24  ;;  %v744_v6 = vmax.f32 %v743_v62, 1e-24 }
 0x1fd   : > { %v1051_v12 = vrot.slane %v1050_v7, 2 }
 0x1fe   : > { %v924_v2 = vadd.f32 %v923_v60, %v922_v57  ;;  %v1037_v3 = vadd.f32 %v1036_v0, %v1035_v63  ;;  %v1060_v4 = vadd.f32 %v1059_v1, %v1058_v58  ;;  %1298 = vrsqrt.f32 %v744_v6 }
 0x1ff   : > { %v1052_v16 = vadd.f32 %v1051_v12, %v1050_v7 }
 0x200   : > { %v925_v5 = vrot.slane %v924_v2, 1  ;;  %v1038_v8 = vrot.slane %v1037_v3, 4  ;;  %v1061_v14 = vrot.slane %v1060_v4, 4 }
 0x201   : > { %v1053_v20 = vrot.slane %v1052_v16, 1 }
 0x202   : > { %v926_v9 = vadd.f32 %v925_v5, %v924_v2  ;;  %v1039_v10 = vadd.f32 %v1038_v8, %v1037_v3  ;;  %v1062_v18 = vadd.f32 %v1061_v14, %v1060_v4 }
 0x203   : > { %v1054_v25 = vadd.f32 %v1053_v20, %v1052_v16 }
 0x204   : > { %v927_v11 = vmax.f32 %v926_v9, 1e-24  ;;  %v1040_v13 = vrot.slane %v1039_v10, 2  ;;  %v1063_v22 = vrot.slane %v1062_v18, 2 }
 0x206   : > { %1300 = vrsqrt.f32 %v927_v11  ;;  %v1041_v15 = vadd.f32 %v1040_v13, %v1039_v10  ;;  %v1064_v28 = vadd.f32 %v1063_v22, %v1062_v18 }
 0x208   : > { %v1042_v17 = vrot.slane %v1041_v15, 1  ;;  %v1299_v23 = vpop.eup %1298  ;;  %v1065_v30 = vrot.slane %v1064_v28, 1 }
 0x20a   : > { %v1043_v19 = vadd.f32 %v1042_v17, %v1041_v15  ;;  %v1066_v26 = vadd.f32 %v1065_v30, %v1064_v28 }
 0x20c   : > { %v1044_v21 = vmax.f32 %v1043_v19, 1e-24 }
 0x20e   : > { %1302 = vrsqrt.f32 %v1044_v21 }
 0x210   : > { %v1301_v24 = vpop.eup %1300 }
 0x211   : > { %v1055_v27 = vmul.f32 %v1301_v24, %v1299_v23 }
 0x213   : > { %v1056_v29 = vmul.f32 %v1055_v27, %v1054_v25 }
 0x215   : > { %1057 = vst [vmem:[%s559_s22] sm:$0x1] %v1056_v29 }
 0x218   : > { %v1303_v31 = vpop.eup %1302 }
 0x219   : > { %v1067_v32 = vmul.f32 %v1303_v31, %v1299_v23 }
 0x21b   : > { %v1068_v33 = vmul.f32 %v1067_v32, %v1066_v26 }
 0x21d   : > { %1069 = vst [vmem:[%s559_s22 + $0x1] sm:$0x1] %v1068_v33 }
 0x21e PF: > { %p18_p9 = scmp.ge.s32.totalorder %s1408_s21, 5   ;;  %s1553_s17 = smov %s1322_s18 }
 0x21f   : > { %s1554_s18 = smov %s1417_s24  ;;  %s1555_s19 = smov %s1408_s21 }
 0x220   :  { %20 = sbr.rel (!%p18_p9) target bundleno = 2 (0x2), region = 238 }

</bundles_post_ra>
